<compile_context>
chip_gen: v7x
topology: tpu7x:2x2x1
jax: 0.10.0
libtpu: 0.0.40
codegen_flags: <defaults>
</compile_context>

<pallas_src>
import math

import jax
import jax.numpy as jnp
import numpy as np
from jax.experimental import pallas as pl
from jax.experimental.pallas import tpu as pltpu


# -----------------------------------------------------------------------------
# Fused kernel: heads MLP -> L -> sample -> log-prob, one batch tile per step.
# -----------------------------------------------------------------------------
def _make_fused_encoder_kernel(n_layers_per_head, h1_dims, nonlinear_last, n_latent,
                               jitter, compute_dtype):
    D = n_latent
    LOG_2PI = math.log(2.0 * math.pi)
    n_heads = len(n_layers_per_head)
    n_rest = sum(nl - 1 for nl in n_layers_per_head)   # layers beyond the fused first one

    def _sigmoid(v):
        # TODO(synk): pl.reciprocal(1.0 + jnp.exp(-v), approx=True) would keep the divide
        # on the EUP; exact divide kept so the f32 path matches the reference tightly.
        return 1.0 / (1.0 + jnp.exp(-v))

    def kernel(x_ref, w1_ref, b1_ref, *refs):
        rest_refs = refs[: 2 * n_rest]                      # (Wt, b) per remaining layer
        eps_ref = refs[2 * n_rest]
        z_ref = refs[2 * n_rest + 1]
        logp_ref = refs[2 * n_rest + 2]

        x = x_ref[...].astype(compute_dtype)                # (TB, n_in)

        # ---- fused first Linear of all three heads: one MXU matmul, shared input ----
        h1 = jnp.dot(x, w1_ref[...], preferred_element_type=jnp.float32) + b1_ref[...]

        heads = []
        off = 0
        widx = 0
        for h in range(n_heads):
            nl = n_layers_per_head[h]
            hcur = h1[:, off:off + h1_dims[h]]
            off += h1_dims[h]
            if nl > 1 or nonlinear_last:
                hcur = _sigmoid(hcur)
            for li in range(1, nl):
                wt = rest_refs[widx][...]                   # (in, out), pre-transposed
                b = rest_refs[widx + 1][...]                # (1, out)
                widx += 2
                hcur = jnp.dot(hcur.astype(compute_dtype), wt,
                               preferred_element_type=jnp.float32) + b
                if li < nl - 1 or nonlinear_last:
                    hcur = _sigmoid(hcur)
            heads.append(hcur)
        mu, log_sigma, cov_flat = heads                     # (TB,D), (TB,D), (TB,D*D)
        tb = mu.shape[0]

        # ---- scale_tril L = tril(cov, -1) + diag(exp(log_sigma) + jitter), in VMEM ----
        diag = jnp.exp(log_sigma) + jitter                  # (TB, D)
        cov3 = cov_flat.reshape(tb, D, D)
        row = jax.lax.broadcasted_iota(jnp.int32, (1, D, D), 1)
        col = jax.lax.broadcasted_iota(jnp.int32, (1, D, D), 2)
        L = (jnp.where(col < row, cov3, 0.0)
             + jnp.where(col == row, 1.0, 0.0) * diag[:, :, None])   # (TB, D, D)
        Lt = jnp.swapaxes(L, -1, -2)                        # Lt[b, d, :] == L[b, :, d]

        # ---- sample: z[s,b,:] = mu[b] + L[b] @ eps[s,b]  (VPU broadcast-FMA over d;
        #      a DxD MXU matmul would idle the systolic array and drain latency) ----
        eps = eps_ref[...]                                  # (n, TB, D) float32
        zacc = jnp.zeros(eps.shape, jnp.float32)
        for d in range(D):
            zacc = zacc + eps[:, :, d:d + 1] * Lt[:, d, :][None, :, :]
        z = mu[None, :, :] + zacc                           # (n, TB, D)
        z_ref[...] = z.astype(z_ref.dtype)

        # ---- log N(z; mu, L L^T): z - mu == L @ eps exactly, so solve(L, z-mu) == eps
        #      and maha == ||eps||^2.  half_log_det folded into the same lane reduce. ----
        inner = 0.5 * (eps * eps) + jnp.log(diag)[None, :, :]        # (n, TB, D)
        logp = (-0.5 * D * LOG_2PI) - jnp.sum(inner, axis=-1)        # (n, TB)
        logp_ref[...] = logp.astype(logp_ref.dtype)

    return kernel


# -----------------------------------------------------------------------------
# Wrapper: full AmortizedGaussianEncoder.forward
# -----------------------------------------------------------------------------
def amortized_gaussian_encoder_forward(x, params, *, cond=None, n=1, jitter=1e-8,
                                       nonlinear_last=False, key,
                                       compute_dtype=jnp.float32, block_b=256):
    """Returns (z, dens_z): z (n, B, n_latent) f32, dens_z (n, B) f32."""
    x_c = x if cond is None else jnp.hstack((x, cond))
    x_c = x_c.astype(jnp.float32)
    B, n_in = x_c.shape

    head_params = [params["mean"], params["log_sigma"], params["cov"]]
    n_layers_per_head = tuple(len(hp) for hp in head_params)
    h1_dims = tuple(hp[0][0].shape[0] for hp in head_params)
    D = head_params[0][-1][0].shape[0]                      # n_latent
    assert head_params[1][-1][0].shape[0] == D
    assert head_params[2][-1][0].shape[0] == D * D

    # Fused first-layer weights (heads share x) + remaining per-head layers,
    # pre-transposed to (in, out) so the kernel never transposes weights.
    w1 = jnp.concatenate([jnp.asarray(hp[0][0], jnp.float32).T for hp in head_params],
                         axis=1).astype(compute_dtype)                       # (n_in, sum_h1)
    b1 = jnp.concatenate([jnp.asarray(hp[0][1], jnp.float32).reshape(1, -1)
                          for hp in head_params], axis=1)                    # (1, sum_h1)
    rest = []
    for hp in head_params:
        for (W, b) in hp[1:]:
            rest.append(jnp.asarray(W, jnp.float32).T.astype(compute_dtype))  # (in, out)
            rest.append(jnp.asarray(b, jnp.float32).reshape(1, -1))           # (1, out)

    # Batch tiling: one grid step per TB rows.  TB=256 keeps the v7x 256-wide MXU fed
    # and is a multiple of 128 for v5e; per-tile VMEM stays far below the 32 MiB scoped
    # default on every generation (no vmem_limit_bytes override needed).
    tb = B if B <= block_b else block_b
    n_tiles = pl.cdiv(B, tb)
    b_pad = n_tiles * tb
    if b_pad != B:
        x_c = jnp.concatenate([x_c, jnp.zeros((b_pad - B, n_in), jnp.float32)], axis=0)

    # eps in the torch.randn layout (n, B, D) -- consumed natively, no transposes.
    eps = jax.random.normal(key, (n, B, D), dtype=jnp.float32)
    if b_pad != B:
        eps = jnp.concatenate([eps, jnp.zeros((n, b_pad - B, D), jnp.float32)], axis=1)

    in_specs = [pl.BlockSpec((tb, n_in), lambda i: (i, 0)),       # x tile
                pl.BlockSpec(w1.shape, lambda i: (0, 0)),         # fused layer-0 W (resident)
                pl.BlockSpec(b1.shape, lambda i: (0, 0))]         # fused layer-0 b
    for a in rest:
        in_specs.append(pl.BlockSpec(a.shape, lambda i: (0, 0)))  # per-layer W/b (resident)
    in_specs.append(pl.BlockSpec((n, tb, D), lambda i: (0, i, 0)))  # eps tile, native layout

    out_shape = (jax.ShapeDtypeStruct((n, b_pad, D), jnp.float32),  # z, torch layout
                 jax.ShapeDtypeStruct((n, b_pad), jnp.float32))     # logp, lane-dense in B
    out_specs = (pl.BlockSpec((n, tb, D), lambda i: (0, i, 0)),
                 pl.BlockSpec((n, tb), lambda i: (0, i)))

    kernel = _make_fused_encoder_kernel(n_layers_per_head, h1_dims, nonlinear_last,
                                        D, jitter, compute_dtype)

    z, dens_z = pl.pallas_call(
        kernel,
        out_shape=out_shape,
        grid_spec=pl.GridSpec(grid=(n_tiles,), in_specs=in_specs, out_specs=out_specs),
        compiler_params=pltpu.CompilerParams(dimension_semantics=("parallel",)),
    )(x_c, w1, b1, *rest, eps)

    if b_pad != B:
        z, dens_z = z[:, :B], dens_z[:, :B]
    return z, dens_z


if __name__ == "__main__":
    n_latent, n_dim, batch, n_samples, hidden = 8, 16, 2, 4, 32
    jitter = 1e-8
    nonlinear_last = False

    keys = jax.random.split(jax.random.PRNGKey(0), 14)
    kx, keps = keys[0], keys[1]
    kiter = iter(keys[2:])

    # Layer sizes mirroring __init__ with mean_layers=sigma_layers=cov_layers=[hidden]:
    #   mean/log_sigma: [n_dim, hidden, n_latent];  cov: [n_dim, hidden, n_latent**2]
    def make_head(sizes):
        layers = []
        for i in range(len(sizes) - 1):
            kW, kb = next(kiter), next(kiter)
            W = 0.3 * jax.random.normal(kW, (sizes[i + 1], sizes[i]), dtype=jnp.float32)
            b = 0.1 * jax.random.normal(kb, (sizes[i + 1],), dtype=jnp.float32)
            layers.append((W, b))
        return layers

    params = {
        "mean": make_head([n_dim, hidden, n_latent]),
        "log_sigma": make_head([n_dim, hidden, n_latent]),
        "cov": make_head([n_dim, hidden, n_latent * n_latent]),
    }
    x = jax.random.normal(kx, (batch, n_dim), dtype=jnp.float32)

    z, dens_z = amortized_gaussian_encoder_forward(
        x, params, n=n_samples, jitter=jitter,
        nonlinear_last=nonlinear_last, key=keps)
    z, dens_z = jax.block_until_ready((z, dens_z))

    # ------------------- NumPy reference of the same forward --------------------
    def head_np(xc, layers, last_sigmoid):
        h = np.asarray(xc, np.float64)
        for i, (W, b) in enumerate(layers):
            h = h @ np.asarray(W, np.float64).T + np.asarray(b, np.float64)
            if i < len(layers) - 1 or last_sigmoid:
                h = 1.0 / (1.0 + np.exp(-h))
        return h

    D, B = n_latent, batch
    mu_r = head_np(x, params["mean"], nonlinear_last)           # (B, D)
    ls_r = head_np(x, params["log_sigma"], nonlinear_last)      # (B, D)
    cov_r = head_np(x, params["cov"], nonlinear_last)           # (B, D*D)
    L_r = np.tril(cov_r.reshape(B, D, D), k=-1)
    for bi in range(B):
        L_r[bi][np.diag_indices(D)] += np.exp(ls_r[bi]) + jitter

    eps_np = np.asarray(jax.random.normal(keps, (n_samples, B, D), dtype=jnp.float32),
                        np.float64)
    z_r = mu_r[None] + np.einsum('bij,sbj->sbi', L_r, eps_np)   # (n, B, D)

    logp_r = np.zeros((n_samples, B))
    for s in range(n_samples):
        for bi in range(B):
            y = np.linalg.solve(L_r[bi], z_r[s, bi] - mu_r[bi])
            maha = float(y @ y)
            hld = float(np.sum(np.log(np.diag(L_r[bi]))))
            logp_r[s, bi] = -0.5 * (D * math.log(2.0 * math.pi) + maha) - hld

    assert z.shape == (n_samples, batch, n_latent)
    assert dens_z.shape == (n_samples, batch)
    assert np.allclose(np.asarray(z), z_r, atol=5e-4, rtol=5e-4)
    assert np.allclose(np.asarray(dens_z), logp_r, atol=2e-3, rtol=2e-3)

    # bf16 MXU-operand path (review item for v6e/v7x): same structure, looser tolerance.
    z16, d16 = amortized_gaussian_encoder_forward(
        x, params, n=n_samples, jitter=jitter, nonlinear_last=nonlinear_last,
        key=keps, compute_dtype=jnp.bfloat16)
    z16, d16 = jax.block_until_ready((z16, d16))
    assert np.allclose(np.asarray(z16), z_r, atol=0.5, rtol=0.1)
    assert np.allclose(np.asarray(d16), logp_r, atol=0.5, rtol=0.1)

    print("KERNEL_OK")
</pallas_src>

<mosaic_0001>
module attributes {stable_mosaic.version = 11 : i64} {
  func.func @kernel(%arg0: i32, %arg1: memref<2x16xf32, #tpu.memory_space<vmem>>, %arg2: memref<16x96xf32, #tpu.memory_space<vmem>>, %arg3: memref<1x96xf32, #tpu.memory_space<vmem>>, %arg4: memref<32x8xf32, #tpu.memory_space<vmem>>, %arg5: memref<1x8xf32, #tpu.memory_space<vmem>>, %arg6: memref<32x8xf32, #tpu.memory_space<vmem>>, %arg7: memref<1x8xf32, #tpu.memory_space<vmem>>, %arg8: memref<32x64xf32, #tpu.memory_space<vmem>>, %arg9: memref<1x64xf32, #tpu.memory_space<vmem>>, %arg10: memref<4x2x8xf32, #tpu.memory_space<vmem>>, %arg11: memref<4x2x8xf32, #tpu.memory_space<vmem>>, %arg12: memref<4x2xf32, #tpu.memory_space<vmem>>) attributes {dimension_semantics = [#tpu.dimension_semantics<parallel>], iteration_bounds = array<i64: 1>, scalar_prefetch = 0 : i64, scratch_operands = 0 : i64, tpu.core_type = #tpu.core_type<tc>, window_params = [{transform_indices = @transform_0, window_bounds = array<i64: 2, 16>}, {pipeline_mode = #tpu.pipeline_mode<synchronous>, transform_indices = @transform_1, window_bounds = array<i64: 16, 96>}, {pipeline_mode = #tpu.pipeline_mode<synchronous>, transform_indices = @transform_2, window_bounds = array<i64: 1, 96>}, {pipeline_mode = #tpu.pipeline_mode<synchronous>, transform_indices = @transform_3, window_bounds = array<i64: 32, 8>}, {pipeline_mode = #tpu.pipeline_mode<synchronous>, transform_indices = @transform_4, window_bounds = array<i64: 1, 8>}, {pipeline_mode = #tpu.pipeline_mode<synchronous>, transform_indices = @transform_5, window_bounds = array<i64: 32, 8>}, {pipeline_mode = #tpu.pipeline_mode<synchronous>, transform_indices = @transform_6, window_bounds = array<i64: 1, 8>}, {pipeline_mode = #tpu.pipeline_mode<synchronous>, transform_indices = @transform_7, window_bounds = array<i64: 32, 64>}, {pipeline_mode = #tpu.pipeline_mode<synchronous>, transform_indices = @transform_8, window_bounds = array<i64: 1, 64>}, {transform_indices = @transform_9, window_bounds = array<i64: 4, 2, 8>}, {transform_indices = @transform_10, window_bounds = array<i64: 4, 2, 8>}, {transform_indices = @transform_11, window_bounds = array<i64: 4, 2>}]} {
    %c0 = arith.constant 0 : index
    %c0_0 = arith.constant 0 : index
    %0 = vector.load %arg1[%c0, %c0_0] : memref<2x16xf32, #tpu.memory_space<vmem>>, vector<2x16xf32>
    %c0_1 = arith.constant 0 : index
    %c0_2 = arith.constant 0 : index
    %1 = vector.load %arg2[%c0_1, %c0_2] : memref<16x96xf32, #tpu.memory_space<vmem>>, vector<16x96xf32>
    %cst = arith.constant dense<0.000000e+00> : vector<2x96xf32>
    %2 = tpu.matmul %0, %1, %cst {dimension_numbers = #tpu.dot_dimension_numbers<[1], [0], [0], [1], [0, 0, 1, 1], [], []>} : vector<2x16xf32>, vector<16x96xf32>, vector<2x96xf32> -> vector<2x96xf32>
    %c0_3 = arith.constant 0 : index
    %c0_4 = arith.constant 0 : index
    %3 = vector.load %arg3[%c0_3, %c0_4] : memref<1x96xf32, #tpu.memory_space<vmem>>, vector<1x96xf32>
    %4 = vector.broadcast %3 : vector<1x96xf32> to vector<2x96xf32>
    %5 = arith.addf %2, %4 : vector<2x96xf32>
    %6 = vector.extract_strided_slice %5 {offsets = [0, 0], sizes = [2, 32], strides = [1, 1]} : vector<2x96xf32> to vector<2x32xf32>
    %cst_5 = arith.constant 0.000000e+00 : f32
    %7 = vector.broadcast %cst_5 : f32 to vector<2x32xf32>
    %8 = arith.subf %7, %6 : vector<2x32xf32>
    %9 = math.exp %8 : vector<2x32xf32>
    %cst_6 = arith.constant 1.000000e+00 : f32
    %10 = vector.broadcast %cst_6 : f32 to vector<2x32xf32>
    %11 = arith.addf %10, %9 : vector<2x32xf32>
    %cst_7 = arith.constant 1.000000e+00 : f32
    %12 = vector.broadcast %cst_7 : f32 to vector<2x32xf32>
    %13 = arith.divf %12, %11 : vector<2x32xf32>
    %c0_8 = arith.constant 0 : index
    %c0_9 = arith.constant 0 : index
    %14 = vector.load %arg4[%c0_8, %c0_9] : memref<32x8xf32, #tpu.memory_space<vmem>>, vector<32x8xf32>
    %c0_10 = arith.constant 0 : index
    %c0_11 = arith.constant 0 : index
    %15 = vector.load %arg5[%c0_10, %c0_11] : memref<1x8xf32, #tpu.memory_space<vmem>>, vector<1x8xf32>
    %cst_12 = arith.constant dense<0.000000e+00> : vector<2x8xf32>
    %16 = tpu.matmul %13, %14, %cst_12 {dimension_numbers = #tpu.dot_dimension_numbers<[1], [0], [0], [1], [0, 0, 1, 1], [], []>} : vector<2x32xf32>, vector<32x8xf32>, vector<2x8xf32> -> vector<2x8xf32>
    %17 = vector.broadcast %15 : vector<1x8xf32> to vector<2x8xf32>
    %18 = arith.addf %16, %17 : vector<2x8xf32>
    %19 = vector.extract_strided_slice %5 {offsets = [0, 32], sizes = [2, 32], strides = [1, 1]} : vector<2x96xf32> to vector<2x32xf32>
    %cst_13 = arith.constant 0.000000e+00 : f32
    %20 = vector.broadcast %cst_13 : f32 to vector<2x32xf32>
    %21 = arith.subf %20, %19 : vector<2x32xf32>
    %22 = math.exp %21 : vector<2x32xf32>
    %cst_14 = arith.constant 1.000000e+00 : f32
    %23 = vector.broadcast %cst_14 : f32 to vector<2x32xf32>
    %24 = arith.addf %23, %22 : vector<2x32xf32>
    %cst_15 = arith.constant 1.000000e+00 : f32
    %25 = vector.broadcast %cst_15 : f32 to vector<2x32xf32>
    %26 = arith.divf %25, %24 : vector<2x32xf32>
    %c0_16 = arith.constant 0 : index
    %c0_17 = arith.constant 0 : index
    %27 = vector.load %arg6[%c0_16, %c0_17] : memref<32x8xf32, #tpu.memory_space<vmem>>, vector<32x8xf32>
    %c0_18 = arith.constant 0 : index
    %c0_19 = arith.constant 0 : index
    %28 = vector.load %arg7[%c0_18, %c0_19] : memref<1x8xf32, #tpu.memory_space<vmem>>, vector<1x8xf32>
    %cst_20 = arith.constant dense<0.000000e+00> : vector<2x8xf32>
    %29 = tpu.matmul %26, %27, %cst_20 {dimension_numbers = #tpu.dot_dimension_numbers<[1], [0], [0], [1], [0, 0, 1, 1], [], []>} : vector<2x32xf32>, vector<32x8xf32>, vector<2x8xf32> -> vector<2x8xf32>
    %30 = vector.broadcast %28 : vector<1x8xf32> to vector<2x8xf32>
    %31 = arith.addf %29, %30 : vector<2x8xf32>
    %32 = vector.extract_strided_slice %5 {offsets = [0, 64], sizes = [2, 32], strides = [1, 1]} : vector<2x96xf32> to vector<2x32xf32>
    %cst_21 = arith.constant 0.000000e+00 : f32
    %33 = vector.broadcast %cst_21 : f32 to vector<2x32xf32>
    %34 = arith.subf %33, %32 : vector<2x32xf32>
    %35 = math.exp %34 : vector<2x32xf32>
    %cst_22 = arith.constant 1.000000e+00 : f32
    %36 = vector.broadcast %cst_22 : f32 to vector<2x32xf32>
    %37 = arith.addf %36, %35 : vector<2x32xf32>
    %cst_23 = arith.constant 1.000000e+00 : f32
    %38 = vector.broadcast %cst_23 : f32 to vector<2x32xf32>
    %39 = arith.divf %38, %37 : vector<2x32xf32>
    %c0_24 = arith.constant 0 : index
    %c0_25 = arith.constant 0 : index
    %40 = vector.load %arg8[%c0_24, %c0_25] : memref<32x64xf32, #tpu.memory_space<vmem>>, vector<32x64xf32>
    %c0_26 = arith.constant 0 : index
    %c0_27 = arith.constant 0 : index
    %41 = vector.load %arg9[%c0_26, %c0_27] : memref<1x64xf32, #tpu.memory_space<vmem>>, vector<1x64xf32>
    %cst_28 = arith.constant dense<0.000000e+00> : vector<2x64xf32>
    %42 = tpu.matmul %39, %40, %cst_28 {dimension_numbers = #tpu.dot_dimension_numbers<[1], [0], [0], [1], [0, 0, 1, 1], [], []>} : vector<2x32xf32>, vector<32x64xf32>, vector<2x64xf32> -> vector<2x64xf32>
    %43 = vector.broadcast %41 : vector<1x64xf32> to vector<2x64xf32>
    %44 = arith.addf %42, %43 : vector<2x64xf32>
    %45 = math.exp %31 : vector<2x8xf32>
    %cst_29 = arith.constant 9.99999993E-9 : f32
    %46 = vector.broadcast %cst_29 : f32 to vector<2x8xf32>
    %47 = arith.addf %45, %46 : vector<2x8xf32>
    %48 = vector.shape_cast %44 : vector<2x64xf32> to vector<2x8x8xf32>
    %49 = tpu.iota {dimensions = array<i32: 1>} : vector<1x8x8xi32>
    %50 = tpu.iota {dimensions = array<i32: 2>} : vector<1x8x8xi32>
    %51 = arith.cmpi slt, %50, %49 : vector<1x8x8xi32>
    %cst_30 = arith.constant 0.000000e+00 : f32
    %52 = vector.shape_cast %51 : vector<1x8x8xi1> to vector<1x8x8xi1>
    %53 = vector.broadcast %52 : vector<1x8x8xi1> to vector<2x8x8xi1>
    %54 = vector.broadcast %cst_30 : f32 to vector<2x8x8xf32>
    %55 = arith.select %53, %48, %54 : vector<2x8x8xi1>, vector<2x8x8xf32>
    %56 = arith.cmpi eq, %50, %49 : vector<1x8x8xi32>
    %cst_31 = arith.constant 1.000000e+00 : f32
    %cst_32 = arith.constant 0.000000e+00 : f32
    %57 = vector.broadcast %cst_31 : f32 to vector<1x8x8xf32>
    %58 = vector.broadcast %cst_32 : f32 to vector<1x8x8xf32>
    %59 = arith.select %56, %57, %58 : vector<1x8x8xi1>, vector<1x8x8xf32>
    %60 = vector.shape_cast %47 : vector<2x8xf32> to vector<2x8x1xf32>
    %61 = vector.broadcast %59 : vector<1x8x8xf32> to vector<2x8x8xf32>
    %62 = vector.broadcast %60 : vector<2x8x1xf32> to vector<2x8x8xf32>
    %63 = arith.mulf %61, %62 : vector<2x8x8xf32>
    %64 = arith.addf %55, %63 : vector<2x8x8xf32>
    %65 = tpu.transpose %64, [0, 2, 1] : vector<2x8x8xf32> -> vector<2x8x8xf32>
    %c0_33 = arith.constant 0 : index
    %c0_34 = arith.constant 0 : index
    %c0_35 = arith.constant 0 : index
    %66 = vector.load %arg10[%c0_33, %c0_34, %c0_35] : memref<4x2x8xf32, #tpu.memory_space<vmem>>, vector<4x2x8xf32>
    %cst_36 = arith.constant 0.000000e+00 : f32
    %67 = vector.broadcast %cst_36 : f32 to vector<4x2x8xf32>
    %68 = vector.extract_strided_slice %66 {offsets = [0, 0, 0], sizes = [4, 2, 1], strides = [1, 1, 1]} : vector<4x2x8xf32> to vector<4x2x1xf32>
    %69 = vector.extract_strided_slice %65 {offsets = [0, 0, 0], sizes = [2, 1, 8], strides = [1, 1, 1]} : vector<2x8x8xf32> to vector<2x1x8xf32>
    %70 = vector.shape_cast %69 : vector<2x1x8xf32> to vector<2x8xf32>
    %71 = vector.shape_cast %70 : vector<2x8xf32> to vector<1x2x8xf32>
    %72 = vector.broadcast %68 : vector<4x2x1xf32> to vector<4x2x8xf32>
    %73 = vector.broadcast %71 : vector<1x2x8xf32> to vector<4x2x8xf32>
    %74 = arith.mulf %72, %73 : vector<4x2x8xf32>
    %75 = arith.addf %67, %74 : vector<4x2x8xf32>
    %76 = vector.extract_strided_slice %66 {offsets = [0, 0, 1], sizes = [4, 2, 1], strides = [1, 1, 1]} : vector<4x2x8xf32> to vector<4x2x1xf32>
    %77 = vector.extract_strided_slice %65 {offsets = [0, 1, 0], sizes = [2, 1, 8], strides = [1, 1, 1]} : vector<2x8x8xf32> to vector<2x1x8xf32>
    %78 = vector.shape_cast %77 : vector<2x1x8xf32> to vector<2x8xf32>
    %79 = vector.shape_cast %78 : vector<2x8xf32> to vector<1x2x8xf32>
    %80 = vector.broadcast %76 : vector<4x2x1xf32> to vector<4x2x8xf32>
    %81 = vector.broadcast %79 : vector<1x2x8xf32> to vector<4x2x8xf32>
    %82 = arith.mulf %80, %81 : vector<4x2x8xf32>
    %83 = arith.addf %75, %82 : vector<4x2x8xf32>
    %84 = vector.extract_strided_slice %66 {offsets = [0, 0, 2], sizes = [4, 2, 1], strides = [1, 1, 1]} : vector<4x2x8xf32> to vector<4x2x1xf32>
    %85 = vector.extract_strided_slice %65 {offsets = [0, 2, 0], sizes = [2, 1, 8], strides = [1, 1, 1]} : vector<2x8x8xf32> to vector<2x1x8xf32>
    %86 = vector.shape_cast %85 : vector<2x1x8xf32> to vector<2x8xf32>
    %87 = vector.shape_cast %86 : vector<2x8xf32> to vector<1x2x8xf32>
    %88 = vector.broadcast %84 : vector<4x2x1xf32> to vector<4x2x8xf32>
    %89 = vector.broadcast %87 : vector<1x2x8xf32> to vector<4x2x8xf32>
    %90 = arith.mulf %88, %89 : vector<4x2x8xf32>
    %91 = arith.addf %83, %90 : vector<4x2x8xf32>
    %92 = vector.extract_strided_slice %66 {offsets = [0, 0, 3], sizes = [4, 2, 1], strides = [1, 1, 1]} : vector<4x2x8xf32> to vector<4x2x1xf32>
    %93 = vector.extract_strided_slice %65 {offsets = [0, 3, 0], sizes = [2, 1, 8], strides = [1, 1, 1]} : vector<2x8x8xf32> to vector<2x1x8xf32>
    %94 = vector.shape_cast %93 : vector<2x1x8xf32> to vector<2x8xf32>
    %95 = vector.shape_cast %94 : vector<2x8xf32> to vector<1x2x8xf32>
    %96 = vector.broadcast %92 : vector<4x2x1xf32> to vector<4x2x8xf32>
    %97 = vector.broadcast %95 : vector<1x2x8xf32> to vector<4x2x8xf32>
    %98 = arith.mulf %96, %97 : vector<4x2x8xf32>
    %99 = arith.addf %91, %98 : vector<4x2x8xf32>
    %100 = vector.extract_strided_slice %66 {offsets = [0, 0, 4], sizes = [4, 2, 1], strides = [1, 1, 1]} : vector<4x2x8xf32> to vector<4x2x1xf32>
    %101 = vector.extract_strided_slice %65 {offsets = [0, 4, 0], sizes = [2, 1, 8], strides = [1, 1, 1]} : vector<2x8x8xf32> to vector<2x1x8xf32>
    %102 = vector.shape_cast %101 : vector<2x1x8xf32> to vector<2x8xf32>
    %103 = vector.shape_cast %102 : vector<2x8xf32> to vector<1x2x8xf32>
    %104 = vector.broadcast %100 : vector<4x2x1xf32> to vector<4x2x8xf32>
    %105 = vector.broadcast %103 : vector<1x2x8xf32> to vector<4x2x8xf32>
    %106 = arith.mulf %104, %105 : vector<4x2x8xf32>
    %107 = arith.addf %99, %106 : vector<4x2x8xf32>
    %108 = vector.extract_strided_slice %66 {offsets = [0, 0, 5], sizes = [4, 2, 1], strides = [1, 1, 1]} : vector<4x2x8xf32> to vector<4x2x1xf32>
    %109 = vector.extract_strided_slice %65 {offsets = [0, 5, 0], sizes = [2, 1, 8], strides = [1, 1, 1]} : vector<2x8x8xf32> to vector<2x1x8xf32>
    %110 = vector.shape_cast %109 : vector<2x1x8xf32> to vector<2x8xf32>
    %111 = vector.shape_cast %110 : vector<2x8xf32> to vector<1x2x8xf32>
    %112 = vector.broadcast %108 : vector<4x2x1xf32> to vector<4x2x8xf32>
    %113 = vector.broadcast %111 : vector<1x2x8xf32> to vector<4x2x8xf32>
    %114 = arith.mulf %112, %113 : vector<4x2x8xf32>
    %115 = arith.addf %107, %114 : vector<4x2x8xf32>
    %116 = vector.extract_strided_slice %66 {offsets = [0, 0, 6], sizes = [4, 2, 1], strides = [1, 1, 1]} : vector<4x2x8xf32> to vector<4x2x1xf32>
    %117 = vector.extract_strided_slice %65 {offsets = [0, 6, 0], sizes = [2, 1, 8], strides = [1, 1, 1]} : vector<2x8x8xf32> to vector<2x1x8xf32>
    %118 = vector.shape_cast %117 : vector<2x1x8xf32> to vector<2x8xf32>
    %119 = vector.shape_cast %118 : vector<2x8xf32> to vector<1x2x8xf32>
    %120 = vector.broadcast %116 : vector<4x2x1xf32> to vector<4x2x8xf32>
    %121 = vector.broadcast %119 : vector<1x2x8xf32> to vector<4x2x8xf32>
    %122 = arith.mulf %120, %121 : vector<4x2x8xf32>
    %123 = arith.addf %115, %122 : vector<4x2x8xf32>
    %124 = vector.extract_strided_slice %66 {offsets = [0, 0, 7], sizes = [4, 2, 1], strides = [1, 1, 1]} : vector<4x2x8xf32> to vector<4x2x1xf32>
    %125 = vector.extract_strided_slice %65 {offsets = [0, 7, 0], sizes = [2, 1, 8], strides = [1, 1, 1]} : vector<2x8x8xf32> to vector<2x1x8xf32>
    %126 = vector.shape_cast %125 : vector<2x1x8xf32> to vector<2x8xf32>
    %127 = vector.shape_cast %126 : vector<2x8xf32> to vector<1x2x8xf32>
    %128 = vector.broadcast %124 : vector<4x2x1xf32> to vector<4x2x8xf32>
    %129 = vector.broadcast %127 : vector<1x2x8xf32> to vector<4x2x8xf32>
    %130 = arith.mulf %128, %129 : vector<4x2x8xf32>
    %131 = arith.addf %123, %130 : vector<4x2x8xf32>
    %132 = vector.shape_cast %18 : vector<2x8xf32> to vector<1x2x8xf32>
    %133 = vector.broadcast %132 : vector<1x2x8xf32> to vector<4x2x8xf32>
    %134 = arith.addf %133, %131 : vector<4x2x8xf32>
    %c0_37 = arith.constant 0 : index
    %c0_38 = arith.constant 0 : index
    %c0_39 = arith.constant 0 : index
    %135 = vector.load %arg11[%c0_37, %c0_38, %c0_39] : memref<4x2x8xf32, #tpu.memory_space<vmem>>, vector<4x2x8xf32>
    tpu.vector_store %arg11[%c0_37, %c0_38, %c0_39], %134 {strides = array<i32>} : memref<4x2x8xf32, #tpu.memory_space<vmem>>, vector<4x2x8xf32>,
    %136 = arith.mulf %66, %66 : vector<4x2x8xf32>
    %cst_40 = arith.constant 5.000000e-01 : f32
    %137 = vector.broadcast %cst_40 : f32 to vector<4x2x8xf32>
    %138 = arith.mulf %137, %136 : vector<4x2x8xf32>
    %139 = math.log %47 : vector<2x8xf32>
    %140 = vector.shape_cast %139 : vector<2x8xf32> to vector<1x2x8xf32>
    %141 = vector.broadcast %140 : vector<1x2x8xf32> to vector<4x2x8xf32>
    %142 = arith.addf %138, %141 : vector<4x2x8xf32>
    %cst_41 = arith.constant dense<0.000000e+00> : vector<4x2xf32>
    %143 = vector.multi_reduction <add>, %142, %cst_41 [2] : vector<4x2x8xf32> to vector<4x2xf32>
    %cst_42 = arith.constant -7.35150814 : f32
    %144 = vector.broadcast %cst_42 : f32 to vector<4x2xf32>
    %145 = arith.subf %144, %143 : vector<4x2xf32>
    %c0_43 = arith.constant 0 : index
    %c0_44 = arith.constant 0 : index
    %146 = vector.load %arg12[%c0_43, %c0_44] : memref<4x2xf32, #tpu.memory_space<vmem>>, vector<4x2xf32>
    tpu.vector_store %arg12[%c0_43, %c0_44], %145 {strides = array<i32>} : memref<4x2xf32, #tpu.memory_space<vmem>>, vector<4x2xf32>,
    return
  }
  func.func @transform_0(%arg0: i32) -> (i32, i32) {
    %c0_i32 = arith.constant 0 : i32
    %c0_i32_0 = arith.constant 0 : i32
    return %arg0, %c0_i32 : i32, i32
  }
  func.func @transform_1(%arg0: i32) -> (i32, i32) {
    %c0_i32 = arith.constant 0 : i32
    %c0_i32_0 = arith.constant 0 : i32
    %c0_i32_1 = arith.constant 0 : i32
    return %c0_i32, %c0_i32_0 : i32, i32
  }
  func.func @transform_2(%arg0: i32) -> (i32, i32) {
    %c0_i32 = arith.constant 0 : i32
    %c0_i32_0 = arith.constant 0 : i32
    %c0_i32_1 = arith.constant 0 : i32
    return %c0_i32, %c0_i32_0 : i32, i32
  }
  func.func @transform_3(%arg0: i32) -> (i32, i32) {
    %c0_i32 = arith.constant 0 : i32
    %c0_i32_0 = arith.constant 0 : i32
    %c0_i32_1 = arith.constant 0 : i32
    return %c0_i32, %c0_i32_0 : i32, i32
  }
  func.func @transform_4(%arg0: i32) -> (i32, i32) {
    %c0_i32 = arith.constant 0 : i32
    %c0_i32_0 = arith.constant 0 : i32
    %c0_i32_1 = arith.constant 0 : i32
    return %c0_i32, %c0_i32_0 : i32, i32
  }
  func.func @transform_5(%arg0: i32) -> (i32, i32) {
    %c0_i32 = arith.constant 0 : i32
    %c0_i32_0 = arith.constant 0 : i32
    %c0_i32_1 = arith.constant 0 : i32
    return %c0_i32, %c0_i32_0 : i32, i32
  }
  func.func @transform_6(%arg0: i32) -> (i32, i32) {
    %c0_i32 = arith.constant 0 : i32
    %c0_i32_0 = arith.constant 0 : i32
    %c0_i32_1 = arith.constant 0 : i32
    return %c0_i32, %c0_i32_0 : i32, i32
  }
  func.func @transform_7(%arg0: i32) -> (i32, i32) {
    %c0_i32 = arith.constant 0 : i32
    %c0_i32_0 = arith.constant 0 : i32
    %c0_i32_1 = arith.constant 0 : i32
    return %c0_i32, %c0_i32_0 : i32, i32
  }
  func.func @transform_8(%arg0: i32) -> (i32, i32) {
    %c0_i32 = arith.constant 0 : i32
    %c0_i32_0 = arith.constant 0 : i32
    %c0_i32_1 = arith.constant 0 : i32
    return %c0_i32, %c0_i32_0 : i32, i32
  }
  func.func @transform_9(%arg0: i32) -> (i32, i32, i32) {
    %c0_i32 = arith.constant 0 : i32
    %c0_i32_0 = arith.constant 0 : i32
    %c0_i32_1 = arith.constant 0 : i32
    return %c0_i32, %arg0, %c0_i32_0 : i32, i32, i32
  }
  func.func @transform_10(%arg0: i32) -> (i32, i32, i32) {
    %c0_i32 = arith.constant 0 : i32
    %c0_i32_0 = arith.constant 0 : i32
    %c0_i32_1 = arith.constant 0 : i32
    return %c0_i32, %arg0, %c0_i32_0 : i32, i32, i32
  }
  func.func @transform_11(%arg0: i32) -> (i32, i32) {
    %c0_i32 = arith.constant 0 : i32
    %c0_i32_0 = arith.constant 0 : i32
    return %c0_i32, %arg0 : i32, i32
  }
}

</mosaic_0001>

<bundles_post_ra>
// kernel: tpu_custom_call.1
= control target key start
LH: loop header
LB: loop body
LE: loop exit
PB: predicated region body
PF: predicated region fallthrough
CT: control target
= control target key end

     0   :  { %v1029_v2 = vmov 0.0|0.0   ;;  %vm1030_vm0 = vmmov 0   ;;  %v1031_v4 = vmov 0.0   ;;  %s1389_s0 = inlined_call_operand.vmem [shape: f32[2,16], index: 0, kind: input, shape index: {}]   ;;  %s1390_s1 = inlined_call_operand.vmem [shape: f32[16,96], index: 1, kind: input, shape index: {}]   ;;  %s1391_s2 = inlined_call_operand.vmem [shape: f32[1,96], index: 2, kind: input, shape index: {}]   ;;  %s1392_s3 = inlined_call_operand.vmem [shape: f32[32,8], index: 3, kind: input, shape index: {}]   ;;  %s1393_s4 = inlined_call_operand.vmem [shape: f32[1,8], index: 4, kind: input, shape index: {}]   ;;  %s1394_s5 = inlined_call_operand.vmem [shape: f32[32,8], index: 5, kind: input, shape index: {}]   ;;  %s1395_s6 = inlined_call_operand.vmem [shape: f32[1,8], index: 6, kind: input, shape index: {}]   ;;  %s1396_s7 = inlined_call_operand.vmem [shape: f32[32,64], index: 7, kind: input, shape index: {}]   ;;  %s1397_s8 = inlined_call_operand.vmem [shape: f32[1,64], index: 8, kind: input, shape index: {}]   ;;  %s1398_s9 = inlined_call_operand.vmem [shape: f32[4,2,8], index: 9, kind: input, shape index: {}]   ;;  %s1399_s10 = inlined_call_operand.hbm [shape: f32[4,2,8], index: 10, kind: output, shape index: {0}]   ;;  %s1400_s11 = inlined_call_operand.vmem [shape: f32[4,2], index: 11, kind: output, shape index: {1}]  }
   0x1   :  { %v39_v0 = vld [vmem:[%s1390_s1] sm:$0xff]  ;;  %v40_v1 = vld [vmem:[%s1390_s1 + $0x8] sm:$0xff]  ;;  %937 = vmatprep.subr.bf16.mxu0 %v1029_v2  ;;  %901 = vmatprep.mubr.msk.f32.mxu0 %vm1030_vm0, %v1031_v4 }
   0x2   :  { %v938_v3 = vpack.c.bf16 %v40_v1, %v39_v0 }
   0x3   :  { %17 = vsyncpa [#allocation3], 0  ;;  %940 = vmatprep.subr.bf16.mxu1 %v1029_v2  ;;  %912 = vmatprep.mubr.msk.f32.mxu1 %vm1030_vm0, %v1031_v4  ;;  %v38_v5 = vld [vmem:[%s1389_s0] sm:$0x3]  ;;  %vm48_vm1 = vcmask 130048   ;;  %v129_v7 = vld [vmem:[%s1392_s3 + $0x8] sm:$0xff]  ;;  %v412_v59 = vlaneseq }
   0x4   :  { %939 = vmatpush3.bf16.msra.mxu0 %v938_v3  ;;  %v128_v6 = vld [vmem:[%s1392_s3] sm:$0xff]  ;;  %v130_v8 = vld [vmem:[%s1392_s3 + $0x10] sm:$0xff]  ;;  %v131_v10 = vld [vmem:[%s1392_s3 + $0x18] sm:$0xff]  ;;  %vm139_vm2 = vcmask 261120   ;;  %s1032_s24 = smov 96   ;;  %s1033_s25 = smov 64  }
   0x5   :  { %946 = vmatprep.subr.bf16.mxu0 %v1029_v2  ;;  %v941_v9 = vpack.c.bf16 %v129_v7, %v128_v6  ;;  %v944_v11 = vpack.c.bf16 %v131_v10, %v130_v8  ;;  %v213_v12 = vld [vmem:[%s1394_s5] sm:$0xff]  ;;  %v214_v13 = vld [vmem:[%s1394_s5 + $0x8] sm:$0xff]  ;;  %v215_v14 = vld [vmem:[%s1394_s5 + $0x10] sm:$0xff]  ;;  %v1034_v34 = vmov 0   ;;  %v1035_v38 = vmov 1   ;;  %s1042_s16 = smov 104  }
   0x6   :  { %v947_v15 = vpack.c.bf16 %v214_v13, %v213_v12  ;;  %v216_v16 = vld [vmem:[%s1394_s5 + $0x18] sm:$0xff]  ;;  %v871_v18 = vld [vmem:[%s1391_s2] ss:$0 sm:$0xff]  ;;  %v299_v27 = vld [vmem:[%s1396_s7 + $0x8] sm:$0xff]  ;;  %983 = vset.pattern.permute.xlu1 %v1034_v34  ;;  %982 = vset.pattern.permute.xlu0 %v1034_v34  ;;  %v1036_v39 = vmov 2   ;;  %v1037_v40 = vmov 3  }
   0x7   :  { %902 = vmatmul.mubr.msk.f32.vlgmr.msra.gmra.mrb[0].mxu0 %vm48_vm1, %v38_v5  ;;  %942 = vmatpush3.bf16.msra.mxu1 %v941_v9  ;;  %v950_v17 = vpack.c.bf16 %v216_v16, %v215_v14  ;;  %v298_v26 = vld [vmem:[%s1396_s7] sm:$0xff]  ;;  %v300_v29 = vld [vmem:[%s1396_s7 + $0x10] sm:$0xff]  ;;  %v301_v30 = vld [vmem:[%s1396_s7 + $0x18] sm:$0xff]  ;;  %v1038_v41 = vmov 4   ;;  %v1039_v44 = vmov 5   ;;  %v1040_v45 = vmov 6  }
   0x8   :  { %923 = vmatprep.mubr.msk.f32.mxu0 %vm1030_vm0, %v1031_v4  ;;  %943 = vmatprep.subr.bf16.mxu1 %v1029_v2  ;;  %v953_v28 = vpack.c.bf16 %v299_v27, %v298_v26  ;;  %v956_v32 = vpack.c.bf16 %v301_v30, %v300_v29  ;;  %v1174_v33 = vld [vmem:[%s1398_s9 + $0x2] sm:$0x3]  ;;  %v1179_v35 = vld [vmem:[%s1398_s9] sm:$0x3]  ;;  %v1186_v36 = vld [vmem:[%s1398_s9 + $0x4] sm:$0x3] }
   0x9   :  { %948 = vmatpush3.bf16.msra.mxu0 %v947_v15  ;;  %562 = vperm.xlu1 %983, %v1174_v33   ;;  %v1191_v37 = vld [vmem:[%s1398_s9 + $0x6] sm:$0x3]  ;;  %v1041_v46 = vmov 7   ;;  %v875_v49 = vld [vmem:[%s1395_s6] ss:$0 sm:$0xff]  ;;  %s1043_s6 = smov 120   ;;  %v794_v9 = vmul.f32 %v1174_v33, %v1174_v33 }
   0xa   :  { %949 = vmatprep.subr.bf16.mxu0 %v1029_v2  ;;  %v877_v53 = vld [vmem:[%s1397_s8] ss:$0 sm:$0xff]  ;;  %v1240_v61 = vshrl.u32 %v412_v59, 7  ;;  %s1044_s8 = smov 88   ;;  %s1045_s3 = smov 112   ;;  %v796_v14 = vmul.f32 %v1191_v37, %v1191_v37  ;;  %vm788_vm3 = vcmask 58368  }
   0xb   :  { %945 = vmatpush3.bf16.msra.mxu1 %v944_v11  ;;  %s1046_s17 = smov 72   ;;  %s1047_s18 = smov 80   ;;  %v798_v12 = vmul.f32 0.5, %v794_v9  ;;  %vm578_vm6 = vcmask 1041409   ;;  %vm844_vm7 = vcmask 1042434   ;;  %vm846_vm8 = vcmask 1043459  }
   0xc   :  { %952 = vmatprep.subr.bf16.mxu1 %v1029_v2  ;;  %v478_v62 = vsub.s32 1, %v1240_v61  ;;  %vm849_vm9 = vcmask 11264  }
   0xd   :  { %951 = vmatpush3.bf16.msra.mxu0 %v950_v17  ;;  %567 = vperm.xlu1 %983, %v1186_v36   ;;  %v800_v17 = vmul.f32 0.5, %v796_v14 }
  0x11   :  { %984 = vset.pattern.permute.xlu1 %v1035_v38 }
  0x12   :  { %590 = vperm.xlu1 %984, %v1179_v35  }
  0x16   :  { %598 = vperm.xlu1 %984, %v1186_v36  }
  0x1a   :  { %602 = vperm.xlu1 %984, %v1191_v37  }
  0x1e   :  { %987 = vset.pattern.permute.xlu1 %v1036_v39 }
  0x1f   :  { %621 = vperm.xlu1 %987, %v1174_v33  }
  0x23   :  { %625 = vperm.xlu1 %987, %v1186_v36  }
  0x27   :  { %988 = vset.pattern.permute.xlu1 %v1037_v40 }
  0x28   :  { %645 = vperm.xlu1 %988, %v1179_v35  }
  0x2c   :  { %653 = vperm.xlu1 %988, %v1186_v36  }
  0x30   :  { %657 = vperm.xlu1 %988, %v1191_v37  }
  0x34   :  { %991 = vset.pattern.permute.xlu1 %v1038_v41 }
  0x35   :  { %677 = vperm.xlu1 %991, %v1174_v33  }
  0x39   :  { %685 = vperm.xlu1 %991, %v1191_v37  }
  0x3d   :  { %993 = vset.pattern.permute.xlu1 %v1039_v44 }
  0x3e   :  { %705 = vperm.xlu1 %993, %v1174_v33  }
  0x42   :  { %709 = vperm.xlu1 %993, %v1186_v36  }
  0x46   :  { %713 = vperm.xlu1 %993, %v1191_v37  }
  0x4a   :  { %994 = vset.pattern.permute.xlu1 %v1040_v45 }
  0x4b   :  { %729 = vperm.xlu1 %994, %v1179_v35  }
  0x4f   :  { %733 = vperm.xlu1 %994, %v1174_v33  }
  0x53   :  { %737 = vperm.xlu1 %994, %v1186_v36  }
  0x57   :  { %741 = vperm.xlu1 %994, %v1191_v37  }
  0x5b   :  { %995 = vset.pattern.permute.xlu1 %v1041_v46 }
  0x5c   :  { %757 = vperm.xlu1 %995, %v1179_v35  }
  0x88   :  { %v1231_v55 = vpop.permute.xlu1 %562 }
  0x8c   :  { %v1237_v60 = vpop.permute.xlu1 %567 }
  0x91   :  { %v1248_v0 = vpop.permute.xlu1 %590 }
  0x95   :  { %v1252_v6 = vpop.permute.xlu1 %598 }
  0x99   :  { %v1254_v7 = vpop.permute.xlu1 %602 }
  0x9e   :  { %v1256_v8 = vpop.permute.xlu1 %621 }
  0xa2   :  { %v1260_v11 = vpop.permute.xlu1 %625 }
  0xa7   :  { %v1264_v15 = vpop.permute.xlu1 %645 }
  0xda   :  { %v118_v19 = vpop.f32.mrb[0].mxu0 }
  0xdb   :  { %v119_v20 = vadd.f32 %v871_v18, %v118_v19  ;;  %v903_v21 = vpop.f32.mrb[1].mxu0  ;;  %v793_v18 = vmul.f32 %v1179_v35, %v1179_v35 }
  0xdd   :  { %v122_v22 = vsub.f32 0.0, %v119_v20  ;;  %v797_v21 = vmul.f32 0.5, %v793_v18 }
  0xdf   :  { %v123_v23 = vmul.f32 1.442695, %v122_v22  ;;  %v795_v22 = vmul.f32 %v1186_v36, %v1186_v36 }
  0xe1   :  { %997 = vpow2.f32 %v123_v23  ;;  %v1271_v23 = vpop.permute.xlu1 %653  ;;  %v799_v26 = vmul.f32 0.5, %v795_v22 }
  0xe5   :  { %v1274_v27 = vpop.permute.xlu1 %657 }
  0xeb   :  { %v998_v24 = vpop.eup %997 }
  0xec   :  { %v125_v25 = vadd.f32 1.0, %v998_v24 }
  0xee   :  { %999 = vrcp.f32 %v125_v25 }
  0xf8   :  { %v1000_v31 = vpop.eup %999 }
  0xf9   :  { %224 = vrot.lane.b32.xlu0 %v1000_v31, %s1032_s24  ;;  %913 = vmatmul.mubr.msk.f32.vlgmr.msra.gmra.mrb[0].mxu1 %vm139_vm2, %v1000_v31 }
  0xfa   :  { %954 = vmatpush3.bf16.msra.mxu1 %v953_v28  ;;  %934 = vmatprep.mubr.msk.f32.mxu1 %vm1030_vm0, %v1031_v4 }
  0xfb   :  { %955 = vmatprep.subr.bf16.mxu1 %v1029_v2  ;;  %v471_v2 = vsub.s32 0, %v1240_v61 }
  0xfd   :  { %309 = vrot.lane.b32.xlu0 %v1000_v31, %s1033_s25  ;;  %v1278_v31 = vpop.permute.xlu1 %677 }
  0xfe   :  { %957 = vmatpush3.bf16.msra.mxu1 %v956_v32 }
 0x101   :  { %557 = vperm.xlu0 %982, %v1179_v35   ;;  %v1280_v32 = vpop.permute.xlu1 %685 }
 0x105   :  { %572 = vperm.xlu0 %982, %v1191_v37  }
 0x109   :  { %985 = vset.pattern.permute.xlu0 %v1035_v38 }
 0x10a   :  { %594 = vperm.xlu0 %985, %v1174_v33  }
 0x10e   :  { %986 = vset.pattern.permute.xlu0 %v1036_v39 }
 0x10f   :  { %617 = vperm.xlu0 %986, %v1179_v35  }
 0x113   :  { %629 = vperm.xlu0 %986, %v1191_v37  }
 0x117   :  { %989 = vset.pattern.permute.xlu0 %v1037_v40 }
 0x118   :  { %649 = vperm.xlu0 %989, %v1174_v33  }
 0x11c   :  { %990 = vset.pattern.permute.xlu0 %v1038_v41 }
 0x11d   :  { %673 = vperm.xlu0 %990, %v1179_v35  }
 0x121   :  { %681 = vperm.xlu0 %990, %v1186_v36  }
 0x125   :  { %992 = vset.pattern.permute.xlu0 %v1039_v44 }
 0x126   :  { %701 = vperm.xlu0 %992, %v1179_v35   ;;  %v1284_v35 = vpop.permute.xlu1 %705 }
 0x12a   :  { %v1288_v39 = vpop.permute.xlu1 %709 }
 0x12e   :  { %v1292_v41 = vpop.permute.xlu1 %713 }
 0x16b   :  { %v225_v42 = vpop.permute.xlu0 %224 }
 0x16c   :  { %924 = vmatmul.mubr.msk.f32.vlgmr.msra.gmra.mrb[2].mxu0 %vm139_vm2, %v225_v42 }
 0x16f   :  { %v310_v43 = vpop.permute.xlu0 %309 }
 0x170   :  { %935 = vmatmul.mubr.msk.f32.vlgmr.msra.gmra.mrb[2].mxu1 %vm139_vm2, %v310_v43  ;;  %v1296_v43 = vpop.permute.xlu1 %729 }
 0x180   :  { %v1282_v34 = vpop.permute.xlu0 %557 }
 0x184   :  { %v1286_v38 = vpop.permute.xlu0 %572 }
 0x189   :  { %v1290_v40 = vpop.permute.xlu0 %594 }
 0x18e   :  { %v1294_v42 = vpop.permute.xlu0 %617 }
 0x192   :  { %v1298_v44 = vpop.permute.xlu0 %629 }
 0x197   :  { %v1300_v45 = vpop.permute.xlu0 %649 }
 0x1cc   :  { %v1223_v47 = vpop.f32.mrb[0].mxu1 }
 0x1cd   :  { %v914_v48 = vpop.f32.mrb[1].mxu1 }
 0x1ce   :  { %v1302_v48 = vpop.permute.xlu1 %733 }
 0x23f   :  { %v294_v50 = vpop.f32.mrb[2].mxu0 }
 0x240   :  { %v295_v51 = vadd.f32 %v875_v49, %v294_v50  ;;  %v925_v52 = vpop.f32.mrb[3].mxu0  ;;  %v1304_v49 = vpop.permute.xlu0 %673 }
 0x241   :  { %v1306_v50 = vpop.permute.xlu1 %737 }
 0x242   :  { %v383_v54 = vmul.f32 1.442695, %v295_v51 }
 0x243   :  { %v379_v56 = vpop.f32.mrb[2].mxu1 }
 0x244   :  { %1001 = vpow2.f32 %v383_v54  ;;  %v1233_v57 = vadd.f32 %v877_v53, %v379_v56  ;;  %v936_v58 = vpop.f32.mrb[3].mxu1  ;;  %v1308_v51 = vpop.permute.xlu0 %681 }
 0x245   :  { %v1310_v52 = vpop.permute.xlu1 %741 }
 0x246   :  { %393 = vrot.lane.b32.xlu0 %v1233_v57, %s1042_s16  ;;  %387 = vrot.lane.b32.xlu1 %v1233_v57, %s1043_s6 }
 0x248   :  { %v1314_v54 = vpop.permute.xlu0 %701 }
 0x249   :  { %v1312_v53 = vpop.permute.xlu1 %757 }
 0x24a   :  { %399 = vrot.lane.b32.xlu0 %v1233_v57, %s1044_s8  ;;  %390 = vrot.lane.b32.xlu1 %v1233_v57, %s1045_s3 }
 0x24e   :  { %v1002_v63 = vpop.eup %1001  ;;  %405 = vrot.lane.b32.xlu0 %v1233_v57, %s1046_s17  ;;  %396 = vrot.lane.b32.xlu1 %v1233_v57, %s1032_s24 }
 0x24f   :  { %v385_v1 = vadd.f32 1e-08, %v1002_v63 }
 0x251   :  { %v479_v3 = vrot.slane %v385_v1, %v478_v62  ;;  %v472_v5 = vrot.slane %v385_v1, %v471_v2  ;;  %1003 = vlog2.f32 %v385_v1  ;;  %v1048_v62 = vmov 1983009808  }
 0x252   :  { %402 = vrot.lane.b32.xlu1 %v1233_v57, %s1047_s18  ;;  %v410_v63 = vunpack.c.l.s4 %v1048_v62 }
 0x253   :  { %481 = vbcast.lane.b32.xlu0 %v479_v3, 256 }
 0x254   :  { %v411_v3 = vunpack.c.0.s8 %v410_v63 }
 0x256   :  { %474 = vbcast.lane.b32.xlu1 %v472_v5, 256  ;;  %v1049_v5 = vmov 1934713408   ;;  %v414_v14 = vsub.s32 %v411_v3, %v1240_v61 }
 0x257   :  { %v442_v9 = vunpack.c.l.s4 %v1049_v5 }
 0x25b   :  { %v1004_v10 = vpop.eup %1003 }
 0x25c   :  { %v802_v13 = vmul.f32 0.6931472, %v1004_v10 }
 0x25e   :  { %v804_v16 = vadd.f32 %v802_v13, %v798_v12  ;;  %v806_v20 = vadd.f32 %v802_v13, %v800_v17  ;;  %v803_v25 = vadd.f32 %v802_v13, %v797_v21  ;;  %v805_v29 = vadd.f32 %v802_v13, %v799_v26 }
 0x25f   :  { %v443_v17 = vunpack.c.0.s8 %v442_v9  ;;  %v461_v21 = vand.u32 127, %v412_v59 }
 0x260   :  { %v810_v19 = vsel %vm788_vm3, %v804_v16, 0.0  ;;  %v816_v24 = vsel %vm788_vm3, %v806_v20, 0.0  ;;  %v807_v28 = vsel %vm788_vm3, %v803_v25, 0.0  ;;  %v813_v30 = vsel %vm788_vm3, %v805_v29, 0.0 }
 0x261   :  { %v446_v25 = vsub.s32 %v443_v17, %v1240_v61  ;;  %vm467_vm4 = vcmp.eq.s32.totalorder %v461_v21, %v1240_v61  ;;  %vm462_vm5 = vcmp.lt.s32.totalorder %v461_v21, %v1240_v61  ;;  %v829_v17 = vsub.s32 %v461_v21, %v1240_v61 }
 0x272   :  { %811 = vadd.xlane.f32.xlu0 %v810_v19 }
 0x276   :  { %817 = vadd.xlane.f32.xlu0 %v816_v24 }
 0x27a   :  { %808 = vadd.xlane.f32.xlu1 %v807_v28 }
 0x27e   :  { %814 = vadd.xlane.f32.xlu1 %v813_v30 }
 0x2b8   :  { %v394_v56 = vpop.permute.xlu0 %393  ;;  %v388_v58 = vpop.permute.xlu1 %387 }
 0x2b9   :  { %v416_v16 = vcombine.low %v388_v58, %v394_v56  ;;  %v468_v56 = vsel %vm467_vm4, 1.0, %v1031_v4 }
 0x2bb   :  { %v423_v22 = vrot.slane %v416_v16, %v414_v14 }
 0x2bc   :  { %v400_v1 = vpop.permute.xlu0 %399  ;;  %v391_v2 = vpop.permute.xlu1 %390 }
 0x2bd   :  { %v408_v10 = vcombine.low %v1233_v57, %v391_v2 }
 0x2bf   :  { %v415_v18 = vrot.slane %v408_v10, %v414_v14 }
 0x2c0   :  { %v406_v12 = vpop.permute.xlu0 %405  ;;  %v397_v13 = vpop.permute.xlu1 %396 }
 0x2c1   :  { %v432_v19 = vcombine.low %v400_v1, %v406_v12  ;;  %v440_v26 = vcombine.low %v415_v18, %v423_v22 }
 0x2c3   :  { %v439_v28 = vrot.slane %v432_v19, %v414_v14  ;;  %v447_v30 = vrot.slane %v440_v26, %v446_v25 }
 0x2c4   :  { %v403_v20 = vpop.permute.xlu1 %402 }
 0x2c5   :  { %v424_v24 = vcombine.low %v397_v13, %v403_v20  ;;  %v482_v58 = vpop.permute.xlu0 %481 }
 0x2c6   :  { %v484_v2 = vmul.f32 %v482_v58, %v468_v56 }
 0x2c7   :  { %v431_v29 = vrot.slane %v424_v24, %v414_v14 }
 0x2c8   :  { %v475_v63 = vpop.permute.xlu1 %474 }
 0x2c9   :  { %v448_v57 = vcombine.low %v431_v29, %v439_v28  ;;  %v483_v3 = vmul.f32 %v475_v63, %v468_v56 }
 0x2cb   :  { %v455_v62 = vrot.slane %v448_v57, %v446_v25 }
 0x2cd   :  { %v457_v1 = vcombine.high %v447_v30, %v455_v62  ;;  %v456_v59 = vcombine.low %v447_v30, %v455_v62 }
 0x2cf   :  { %v466_v5 = vsel %vm462_vm5, %v457_v1, 0.0  ;;  %v465_v9 = vsel %vm462_vm5, %v456_v59, 0.0 }
 0x2d0   :  { %v486_v10 = vadd.f32 %v484_v2, %v466_v5  ;;  %v485_v12 = vadd.f32 %v483_v3, %v465_v9 }
 0x2d2   :  { %519 = vxpose.xlu0.b32.start.end [1/1] (short) (narrow) %v486_v10, 8  ;;  %487 = vxpose.xlu1.b32.start.end [1/1] (short) (narrow) %v485_v12, 8 }
 0x2f0   :  { %765 = vperm.xlu1 %995, %v1186_v36  }
 0x2f4   :  { %769 = vperm.xlu1 %995, %v1191_v37  }
 0x2fb   :  { %996 = vset.pattern.permute.xlu0 %v1041_v46 }
 0x2fc   :  { %761 = vperm.xlu0 %996, %v1174_v33  }
 0x2ff   :  { %v812_v4 = vpop.xlane.xlu0 %811 }
 0x300   :  { %v820_v18 = vsub.f32 -7.351508, %v812_v4 }
 0x302   :  { %v834_v25 = vrot.slane %v820_v18, %v829_v17 }
 0x303   :  { %v818_v14 = vpop.xlane.xlu0 %817 }
 0x304   :  { %v822_v19 = vsub.f32 -7.351508, %v818_v14 }
 0x306   :  { %v842_v37 = vrot.slane %v822_v19, %v829_v17 }
 0x307   :  { %v809_v13 = vpop.xlane.xlu1 %808 }
 0x308   :  { %v819_v16 = vsub.f32 -7.351508, %v809_v13 }
 0x30a   :  { %v830_v20 = vrot.slane %v819_v16, %v829_v17 }
 0x30b   :  { %v815_v22 = vpop.xlane.xlu1 %814 }
 0x30c   :  { %v821_v24 = vsub.f32 -7.351508, %v815_v22  ;;  %v843_v46 = vsel %vm578_vm6, %v834_v25, %v830_v20 }
 0x30e   :  { %v838_v36 = vrot.slane %v821_v24, %v829_v17 }
 0x310   :  { %v845_v33 = vsel %vm844_vm7, %v838_v36, %v843_v46 }
 0x311   :  { %v847_v26 = vsel %vm846_vm8, %v842_v37, %v845_v33 }
 0x312   :  { %850 = vst.msk [vmem:[%s1400_s11] sm:$0xf] %vm849_vm9, %v847_v26 }
 0x352   :  { %v535_v61 = vpop.trf.xlu0  ;;  %v503_v21 = vpop.trf.xlu1 }
 0x353   :  { %v577_v28 = vrot.slane %v535_v61, 7  ;;  %v633_v29 = vrot.slane %v535_v61, 1  ;;  %v661_v57 = vrot.slane %v535_v61, 2  ;;  %v605_v30 = vrot.slane %v503_v21, 1 }
 0x354   :  { %v632_v62 = vrot.slane %v503_v21, 2  ;;  %v660_v56 = vrot.slane %v503_v21, 3  ;;  %v688_v58 = vrot.slane %v503_v21, 4  ;;  %v689_v63 = vrot.slane %v535_v61, 3 }
 0x355   :  { %v579_v1 = vsel %vm578_vm6, %v577_v28, %v503_v21  ;;  %v606_v59 = vsel %vm578_vm6, %v535_v61, %v605_v30  ;;  %v716_v2 = vrot.slane %v503_v21, 5  ;;  %v717_v3 = vrot.slane %v535_v61, 4 }
 0x356   :  { %v581_v5 = vmul.f32 %v579_v1, %v1282_v34  ;;  %v583_v9 = vmul.f32 %v579_v1, %v1237_v60  ;;  %v608_v10 = vmul.f32 %v606_v59, %v1248_v0  ;;  %v610_v12 = vmul.f32 %v606_v59, %v1252_v6 }
 0x357   :  { %v634_v4 = vsel %vm578_vm6, %v633_v29, %v632_v62  ;;  %v662_v13 = vsel %vm578_vm6, %v661_v57, %v660_v56  ;;  %v690_v17 = vsel %vm578_vm6, %v689_v63, %v688_v58  ;;  %v718_v34 = vsel %vm578_vm6, %v717_v3, %v716_v2 }
 0x358   :  { %v612_v14 = vadd.f32 %v608_v10, %v581_v5  ;;  %v636_v16 = vmul.f32 %v634_v4, %v1294_v42  ;;  %v614_v18 = vadd.f32 %v610_v12, %v583_v9  ;;  %v664_v20 = vmul.f32 %v662_v13, %v1264_v15 }
 0x359   :  { %v744_v60 = vrot.slane %v503_v21, 6  ;;  %v745_v22 = vrot.slane %v535_v61, 5  ;;  %v772_v0 = vrot.slane %v503_v21, 7  ;;  %v773_v24 = vrot.slane %v535_v61, 6  ;;  %v873_v61 = vld [vmem:[%s1393_s4] ss:$0 sm:$0xff] }
 0x35a   :  { %v640_v19 = vadd.f32 %v636_v16, %v612_v14  ;;  %v692_v25 = vmul.f32 %v690_v17, %v1304_v49  ;;  %v584_v36 = vmul.f32 %v579_v1, %v1286_v38  ;;  %v611_v37 = vmul.f32 %v606_v59, %v1254_v7  ;;  %s1050_s4 = smov [#allocation2]  }
 0x35b   :  { %v638_v42 = vmul.f32 %v634_v4, %v1260_v11  ;;  %v746_v46 = vsel %vm578_vm6, %v745_v22, %v744_v60  ;;  %v720_v15 = vmul.f32 %v718_v34, %v1314_v54  ;;  %v774_v28 = vsel %vm578_vm6, %v773_v24, %v772_v0  ;;  %s856_s21 = sshll.u32 %s1050_s4, 4  ;;  %s857_s21 = int_to_ptr.vmem [resolvable:$true] %s856_s21 }
 0x35c   :  { %v668_v6 = vadd.f32 %v664_v20, %v640_v19  ;;  %v748_v49 = vmul.f32 %v746_v46, %v1296_v43  ;;  %v615_v38 = vadd.f32 %v611_v37, %v584_v36  ;;  %v666_v7 = vmul.f32 %v662_v13, %v1271_v23  ;;  %s1005_s2 = scalar_lea.vmem %s857_s21, 128  ;;  %p1010_p1 = scmp.lt.s32.totalorder %s857_s21, %s857_s21 }
 0x35d   :  { %v642_v26 = vadd.f32 %v638_v42, %v614_v18  ;;  %v776_v11 = vmul.f32 %v774_v28, %v1312_v53  ;;  %v639_v57 = vmul.f32 %v634_v4, %v1298_v44  ;;  %v210_v54 = vadd.f32 %v873_v61, %v1223_v47  ;;  %p1006_p0 = scmp.ne.s32.totalorder %s857_s21, %s1005_s2  ;;  %p1011_p2 = scmp.lt.s32.totalorder %s1005_s2, %s1005_s2 }
 0x35e   :  { %v696_v33 = vadd.f32 %v692_v25, %v668_v6  ;;  %v582_v58 = vmul.f32 %v579_v1, %v1231_v55  ;;  %v609_v63 = vmul.f32 %v606_v59, %v1290_v40  ;;  %v694_v2 = vmul.f32 %v690_v17, %v1308_v51 }
 0x35f   :  { %v670_v30 = vadd.f32 %v666_v7, %v642_v26  ;;  %v643_v56 = vadd.f32 %v639_v57, %v615_v38  ;;  %v667_v3 = vmul.f32 %v662_v13, %v1274_v27  ;;  %v722_v44 = vmul.f32 %v718_v34, %v1288_v39  ;;  %p1012_p3 = por %p1011_p2, %p1010_p1 }
 0x360   :  { %v724_v21 = vadd.f32 %v720_v15, %v696_v33  ;;  %v613_v5 = vadd.f32 %v609_v63, %v582_v58  ;;  %v695_v47 = vmul.f32 %v690_v17, %v1280_v32  ;;  %v637_v9 = vmul.f32 %v634_v4, %v1256_v8 }
 0x361   :  { %v698_v23 = vadd.f32 %v694_v2, %v670_v30  ;;  %v671_v53 = vadd.f32 %v667_v3, %v643_v56  ;;  %v750_v40 = vmul.f32 %v746_v46, %v1306_v50  ;;  %v723_v51 = vmul.f32 %v718_v34, %v1292_v41  ;;  %p1013_p4 = pnand %p1012_p3, %p1006_p0 }
 0x362   :  { %v752_v29 = vadd.f32 %v748_v49, %v724_v21  ;;  %v641_v1 = vadd.f32 %v637_v9, %v613_v5  ;;  %v665_v27 = vmul.f32 %v662_v13, %v1300_v45  ;;  %v751_v39 = vmul.f32 %v746_v46, %v1310_v52 }
 0x363   :  { %v726_v10 = vadd.f32 %v722_v44, %v698_v23  ;;  %v699_v55 = vadd.f32 %v695_v47, %v671_v53  ;;  %v693_v32 = vmul.f32 %v690_v17, %v1278_v31  ;;  %v721_v45 = vmul.f32 %v718_v34, %v1284_v35 }
 0x364   :  { %v780_v62 = vadd.f32 %v776_v11, %v752_v29  ;;  %v669_v18 = vadd.f32 %v665_v27, %v641_v1  ;;  %v749_v0 = vmul.f32 %v746_v46, %v1302_v48 }
 0x365   :  { %v754_v12 = vadd.f32 %v750_v40, %v726_v10  ;;  %v727_v16 = vadd.f32 %v723_v51, %v699_v55 }
 0x366   :  { %v784_v43 = vadd.f32 %v780_v62, %v210_v54  ;;  %v697_v22 = vadd.f32 %v693_v32, %v669_v18 }
 0x367   :  { %v755_v20 = vadd.f32 %v751_v39, %v727_v16 }
 0x368   :  { %789 = vst.msk [vmem:[#allocation2] sm:$0x3] %vm788_vm3, %v784_v43  ;;  %v725_v13 = vadd.f32 %v721_v45, %v697_v22 }
 0x36a   :  { %v753_v52 = vadd.f32 %v749_v0, %v725_v13 }
 0x36f   :  { %v766_v59 = vpop.permute.xlu1 %765 }
 0x370   :  { %v778_v14 = vmul.f32 %v774_v28, %v766_v59 }
 0x372   :  { %v782_v19 = vadd.f32 %v778_v14, %v754_v12 }
 0x373   :  { %v770_v8 = vpop.permute.xlu1 %769 }
 0x374   :  { %v786_v4 = vadd.f32 %v782_v19, %v210_v54  ;;  %v779_v60 = vmul.f32 %v774_v28, %v770_v8 }
 0x376   :  { %791 = vst.msk [vmem:[#allocation2 + $0x4] sm:$0x3] %vm788_vm3, %v786_v4  ;;  %v783_v41 = vadd.f32 %v779_v60, %v755_v20 }
 0x378   :  { %v787_v50 = vadd.f32 %v783_v41, %v210_v54 }
 0x37a   :  { %792 = vst.msk [vmem:[#allocation2 + $0x6] sm:$0x3] %vm788_vm3, %v787_v50 }
 0x37b   :  { %v762_v24 = vpop.permute.xlu0 %761 }
 0x37c   :  { %v777_v6 = vmul.f32 %v774_v28, %v762_v24 }
 0x37e   :  { %v781_v31 = vadd.f32 %v777_v6, %v753_v52 }
 0x380   :  { %v785_v17 = vadd.f32 %v781_v31, %v210_v54 }
 0x382   :  { %790 = vst.msk [vmem:[#allocation2 + $0x2] sm:$0x3] %vm788_vm3, %v785_v17 }
 0x383   :  { %1016 = shalt.err (!%p1013_p4)
}
 0x384   :  { %s1017_s23 = scalar_lea.hbm %s1399_s10, 128 }
 0x385   :  { %p1018_p5 = scmp.ne.s32.totalorder %s1399_s10, %s1017_s23  ;;  %p1021_p6 = scmp.lt.u32.totalorder %s1017_s23, %s1399_s10 }
 0x387   :  { %p1023_p7 = pnand %p1021_p6, %p1018_p5 }
 0x389   :  { %1026 = shalt.err (!%p1023_p7)
}
 0x38a   :  { %s1051_s7 = smov 32   ;;  %s1052_s0 = smov 2  }
 0x38b   :  { %862 = dma.vmem_to_hbm [thread:$0]  %s857_s21, 128, %s1399_s10, [#allocation3], %s1051_s7, %s1051_s7, %s1052_s0  }
 0x38c   :  { %1027 = dma.done.wait [#allocation3], 128  }
 0x38d   :  { %1028 = vsyncadd [#allocation3], 4294967168 }
 0x38e   :  { %870 = vsyncpa [#allocation3], 1 }

</bundles_post_ra>
